<compile_context>
chip_gen: v5e
topology: v5e:2x2
jax: 0.10.0
libtpu: 0.0.40
codegen_flags: <defaults>
</compile_context>

<pallas_src>
import jax
import jax.numpy as jnp
from jax.experimental import pallas as pl
from jax.experimental.pallas import tpu as pltpu


def patch_embed_kernel(x_ref, w_ref, add_ref, cls_ref, o_ref):
    # x_ref:   (Bb, P, K)     patch rows for Bb batch elements (f32 or bf16)
    # w_ref:   (K, Dp)        projection weight (lane-padded), VMEM-resident
    # add_ref: (P, Dp)        bias + pos[1:]  (f32), VMEM-resident
    # cls_ref: (1, Dp)        cls_token + pos[0] (f32), VMEM-resident
    # o_ref:   (Bb, P+1, Dp)  full output block (f32), cls row included
    bb, p, k = x_ref.shape
    dp = w_ref.shape[1]

    # One MXU matmul covering all Bb*P rows of this grid step (f32 accumulation).
    x2d = x_ref[...].reshape(bb * p, k)
    proj = jnp.dot(x2d, w_ref[...], preferred_element_type=jnp.float32)

    # Row 0: batch-invariant cls row.  Rows 1..P: projection + (bias+pos).
    o_ref[:, 0:1, :] = jnp.broadcast_to(cls_ref[...], (bb, 1, dp)).astype(o_ref.dtype)
    o_ref[:, 1:, :] = (proj.reshape(bb, p, dp) + add_ref[...]).astype(o_ref.dtype)


def _pick_block_b(B, P, K, Dp, vmem_budget=20 << 20):
    """Largest divisor of B whose block fits the VMEM budget, capped near the
    MXU-friendly 128-512 row range.  Once a block already fills MXU sublanes
    (>=128 rows), prefer leaving >=2 grid steps so a second TensorCore
    (megacore / v7x) has work."""
    def fits(bb):
        rows = bb * P
        ws = 4 * (2 * rows * K            # double-buffered input block
                  + 2 * bb * (P + 1) * Dp  # double-buffered output block
                  + 2 * K * Dp             # weight (worst case double-buffered)
                  + (P + 1) * Dp)          # row_add + cls_row
        return rows <= 512 and ws <= vmem_budget

    valid = [d for d in range(1, B + 1) if B % d == 0 and fits(d)] or [1]
    best = max(valid)
    multi = [d for d in valid if B // d >= 2 and d * P >= 128]
    if B // best < 2 and multi:
        best = max(multi)
    return best


def patch_embeddings(x_nchw, w_kd, bias, cls_tok, pos, *, t,
                     compute_dtype=jnp.float32, block_b=None):
    """Forward pass of the PyTorch PatchEmbeddings module.

    x_nchw: (B, ch, h, w) float32, PyTorch NCHW convention.
    w_kd:   (K, D) projection weight (torch Linear weight, transposed).
    bias:   (1, D), cls_tok: (1, D), pos: (P+1, D).
    Returns (B, P+1, D) float32.
    """
    B, ch, h, w = x_nchw.shape
    P = (h // t) * (w // t)
    K = t * t * ch
    D = w_kd.shape[1]

    # Module semantics: flat permute(0,2,3,1).reshape — exactly as the PyTorch
    # forward does it (NOT spatial t x t patch extraction).
    xp = jnp.transpose(x_nchw, (0, 2, 3, 1)).reshape(B, P, K).astype(compute_dtype)
    wk = w_kd.astype(compute_dtype)

    # Lane-dense output: pad the last dim to a multiple of 128 (sliced back
    # below only if padding was actually needed; no-op for D % 128 == 0).
    Dp = ((D + 127) // 128) * 128
    pad = Dp - D
    if pad:
        wk = jnp.pad(wk, ((0, 0), (0, pad)))
        bias_p = jnp.pad(bias, ((0, 0), (0, pad)))
        pos_p = jnp.pad(pos, ((0, 0), (0, pad)))
        cls_p = jnp.pad(cls_tok, ((0, 0), (0, pad)))
    else:
        bias_p, pos_p, cls_p = bias, pos, cls_tok

    # Batch-invariant terms folded once (hoisted out of the kernel entirely).
    cls_row = (cls_p + pos_p[0:1, :]).astype(jnp.float32)   # (1, Dp)
    row_add = (bias_p + pos_p[1:, :]).astype(jnp.float32)   # (P, Dp)

    Bb = block_b or _pick_block_b(B, P, K, Dp)
    assert B % Bb == 0, "block_b must divide the batch"
    grid = (B // Bb,)

    out_p = pl.pallas_call(
        patch_embed_kernel,
        out_shape=jax.ShapeDtypeStruct((B, P + 1, Dp), jnp.float32),
        grid_spec=pltpu.PrefetchScalarGridSpec(
            num_scalar_prefetch=0,
            grid=grid,
            in_specs=[
                pl.BlockSpec((Bb, P, K), lambda g: (g, 0, 0)),
                pl.BlockSpec((K, Dp), lambda g: (0, 0)),   # resident across steps
                pl.BlockSpec((P, Dp), lambda g: (0, 0)),   # resident across steps
                pl.BlockSpec((1, Dp), lambda g: (0, 0)),   # resident across steps
            ],
            out_specs=pl.BlockSpec((Bb, P + 1, Dp), lambda g: (g, 0, 0)),
        ),
        compiler_params=pltpu.CompilerParams(
            dimension_semantics=("parallel",),
            # fuse the transpose/reshape(/cast) producer of xp into the input DMA
            allow_input_fusion=[True, False, False, False],
        ),
    )(xp, wk, row_add, cls_row)

    return out_p if pad == 0 else out_p[..., :D]


if __name__ == "__main__":
    # Small shapes consistent with the module: D=32, t=4, h=w=16, ch=4, B=2
    B, ch, h, w, t, D = 2, 4, 16, 16, 4, 32
    P = (h // t) * (w // t)          # num_patches = 16
    K = t * t * ch                   # patch dim   = 64

    key = jax.random.PRNGKey(0)
    k_x, k_w, k_b, k_cls, k_pos = jax.random.split(key, 5)

    x = jax.random.normal(k_x, (B, ch, h, w), jnp.float32)
    # Parameters (shapes match torch.nn.Linear(K, D), cls_token, pos_embeds)
    w_torch = jax.random.normal(k_w, (D, K), jnp.float32) * (1.0 / K ** 0.5)
    bias = jax.random.normal(k_b, (1, D), jnp.float32) * 0.01
    cls_tok = jax.random.normal(k_cls, (1, D), jnp.float32)
    pos = jax.random.normal(k_pos, (P + 1, D), jnp.float32)

    # Pure-JAX reference (mirrors the PyTorch forward exactly)
    xp_ref = jnp.transpose(x, (0, 2, 3, 1)).reshape(B, P, K)
    proj_ref = xp_ref @ w_torch.T + bias[0]
    ref = jnp.concatenate(
        [jnp.broadcast_to(cls_tok[None, :, :], (B, 1, D)), proj_ref], axis=1
    ) + pos[None, :, :]

    # f32 compute path (exact check)
    out = jax.block_until_ready(
        patch_embeddings(x, w_torch.T, bias, cls_tok, pos, t=t))
    assert out.shape == (B, P + 1, D)
    assert jnp.allclose(out, ref, atol=1e-4, rtol=1e-4), "f32 mismatch vs reference"

    # bf16 matmul path (v6e/v7x MXU-peak dtype; f32 accumulation) — looser check
    out_bf16 = jax.block_until_ready(
        patch_embeddings(x, w_torch.T, bias, cls_tok, pos, t=t,
                         compute_dtype=jnp.bfloat16))
    assert jnp.allclose(out_bf16, ref, atol=1e-1, rtol=1e-1), "bf16 mismatch vs reference"

    print("KERNEL_OK")
</pallas_src>

<mosaic_0001>
module attributes {stable_mosaic.version = 11 : i64} {
  func.func @patch_embed_kernel(%arg0: i32, %arg1: memref<2x16x64xf32, #tpu.memory_space<vmem>>, %arg2: memref<64x128xf32, #tpu.memory_space<vmem>>, %arg3: memref<16x128xf32, #tpu.memory_space<vmem>>, %arg4: memref<1x128xf32, #tpu.memory_space<vmem>>, %arg5: memref<2x17x128xf32, #tpu.memory_space<vmem>>) attributes {dimension_semantics = [#tpu.dimension_semantics<parallel>], iteration_bounds = array<i64: 1>, scalar_prefetch = 0 : i64, scratch_operands = 0 : i64, tpu.core_type = #tpu.core_type<tc>, window_params = [{transform_indices = @transform_0, window_bounds = array<i64: 2, 16, 64>}, {pipeline_mode = #tpu.pipeline_mode<synchronous>, transform_indices = @transform_1, window_bounds = array<i64: 64, 128>}, {pipeline_mode = #tpu.pipeline_mode<synchronous>, transform_indices = @transform_2, window_bounds = array<i64: 16, 128>}, {pipeline_mode = #tpu.pipeline_mode<synchronous>, transform_indices = @transform_3, window_bounds = array<i64: 1, 128>}, {transform_indices = @transform_4, window_bounds = array<i64: 2, 17, 128>}]} {
    %c0 = arith.constant 0 : index
    %c0_0 = arith.constant 0 : index
    %c0_1 = arith.constant 0 : index
    %0 = vector.load %arg1[%c0, %c0_0, %c0_1] : memref<2x16x64xf32, #tpu.memory_space<vmem>>, vector<2x16x64xf32>
    %1 = vector.shape_cast %0 : vector<2x16x64xf32> to vector<32x64xf32>
    %c0_2 = arith.constant 0 : index
    %c0_3 = arith.constant 0 : index
    %2 = vector.load %arg2[%c0_2, %c0_3] : memref<64x128xf32, #tpu.memory_space<vmem>>, vector<64x128xf32>
    %cst = arith.constant dense<0.000000e+00> : vector<32x128xf32>
    %3 = tpu.matmul %1, %2, %cst {dimension_numbers = #tpu.dot_dimension_numbers<[1], [0], [0], [1], [0, 0, 1, 1], [], []>} : vector<32x64xf32>, vector<64x128xf32>, vector<32x128xf32> -> vector<32x128xf32>
    %c0_4 = arith.constant 0 : index
    %c0_5 = arith.constant 0 : index
    %4 = vector.load %arg4[%c0_4, %c0_5] : memref<1x128xf32, #tpu.memory_space<vmem>>, vector<1x128xf32>
    %5 = vector.shape_cast %4 : vector<1x128xf32> to vector<1x1x128xf32>
    %6 = vector.broadcast %5 : vector<1x1x128xf32> to vector<2x1x128xf32>
    %c0_6 = arith.constant 0 : index
    %c0_7 = arith.constant 0 : index
    %c0_8 = arith.constant 0 : index
    %7 = vector.load %arg5[%c0_6, %c0_7, %c0_8] : memref<2x17x128xf32, #tpu.memory_space<vmem>>, vector<2x1x128xf32>
    tpu.vector_store %arg5[%c0_6, %c0_7, %c0_8], %6 {strides = array<i32>} : memref<2x17x128xf32, #tpu.memory_space<vmem>>, vector<2x1x128xf32>,
    %8 = vector.shape_cast %3 : vector<32x128xf32> to vector<2x16x128xf32>
    %c0_9 = arith.constant 0 : index
    %c0_10 = arith.constant 0 : index
    %9 = vector.load %arg3[%c0_9, %c0_10] : memref<16x128xf32, #tpu.memory_space<vmem>>, vector<16x128xf32>
    %10 = vector.shape_cast %9 : vector<16x128xf32> to vector<1x16x128xf32>
    %11 = vector.broadcast %10 : vector<1x16x128xf32> to vector<2x16x128xf32>
    %12 = arith.addf %8, %11 : vector<2x16x128xf32>
    %c0_11 = arith.constant 0 : index
    %c1 = arith.constant 1 : index
    %c0_12 = arith.constant 0 : index
    %13 = vector.load %arg5[%c0_11, %c1, %c0_12] : memref<2x17x128xf32, #tpu.memory_space<vmem>>, vector<2x16x128xf32>
    tpu.vector_store %arg5[%c0_11, %c1, %c0_12], %12 {strides = array<i32>} : memref<2x17x128xf32, #tpu.memory_space<vmem>>, vector<2x16x128xf32>,
    return
  }
  func.func @transform_0(%arg0: i32) -> (i32, i32, i32) {
    %c0_i32 = arith.constant 0 : i32
    %c0_i32_0 = arith.constant 0 : i32
    %c0_i32_1 = arith.constant 0 : i32
    return %arg0, %c0_i32, %c0_i32_0 : i32, i32, i32
  }
  func.func @transform_1(%arg0: i32) -> (i32, i32) {
    %c0_i32 = arith.constant 0 : i32
    %c0_i32_0 = arith.constant 0 : i32
    %c0_i32_1 = arith.constant 0 : i32
    return %c0_i32, %c0_i32_0 : i32, i32
  }
  func.func @transform_2(%arg0: i32) -> (i32, i32) {
    %c0_i32 = arith.constant 0 : i32
    %c0_i32_0 = arith.constant 0 : i32
    %c0_i32_1 = arith.constant 0 : i32
    return %c0_i32, %c0_i32_0 : i32, i32
  }
  func.func @transform_3(%arg0: i32) -> (i32, i32) {
    %c0_i32 = arith.constant 0 : i32
    %c0_i32_0 = arith.constant 0 : i32
    %c0_i32_1 = arith.constant 0 : i32
    return %c0_i32, %c0_i32_0 : i32, i32
  }
  func.func @transform_4(%arg0: i32) -> (i32, i32, i32) {
    %c0_i32 = arith.constant 0 : i32
    %c0_i32_0 = arith.constant 0 : i32
    %c0_i32_1 = arith.constant 0 : i32
    return %arg0, %c0_i32, %c0_i32_0 : i32, i32, i32
  }
}

</mosaic_0001>

<bundles_post_ra>
// kernel: tpu_custom_call.1
= control target key start
LH: loop header
LB: loop body
LE: loop exit
PB: predicated region body
PF: predicated region fallthrough
CT: control target
= control target key end

     0   :  { %9 = vsyncpa [#allocation3], 0  ;;  %s306_s0 = inlined_call_operand.hbm [shape: f32[2,16,64], index: 0, kind: input, shape index: {}]   ;;  %s307_s1 = inlined_call_operand.hbm [shape: f32[64,128], index: 1, kind: input, shape index: {}]   ;;  %s308_s2 = inlined_call_operand.hbm [shape: f32[16,128], index: 2, kind: input, shape index: {}]   ;;  %s309_s3 = inlined_call_operand.vmem [shape: f32[1,128], index: 3, kind: input, shape index: {}]   ;;  %s310_s4 = inlined_call_operand.vmem [shape: f32[2,17,128], index: 4, kind: output, shape index: {}]  }
   0x1   :  { %10 = vsyncpa [#allocation5], 0  ;;  %s28_s17 = sshll.u32 %s307_s1, 4  ;;  %s246_s18 = smov [#allocation4]   ;;  %s29_s17 = int_to_ptr.hbm [resolvable:$true] %s28_s17 }
   0x2   :  { %s30_s19 = sshll.u32 %s246_s18, 4  ;;  %s15_s22 = sshll.u32 %s306_s0, 4  ;;  %s31_s19 = int_to_ptr.vmem [resolvable:$true] %s30_s19  ;;  %s16_s22 = int_to_ptr.hbm [resolvable:$true] %s15_s22 }
   0x3   :  { %s247_s23 = smov 128   ;;  %s248_s24 = smov 8  }
   0x4   :  { %36 = dma.hbm_to_vmem [thread:$0]  %s29_s17, 1024, %s31_s19, [#allocation5], %s247_s23, %s247_s23, %s248_s24  }
   0x5   :  { %s249_s25 = smov [#allocation2]   ;;  %s41_s29 = sshll.u32 %s308_s2, 4  ;;  %s42_s29 = int_to_ptr.hbm [resolvable:$true] %s41_s29 }
   0x6   :  { %s17_s26 = sshll.u32 %s249_s25, 4  ;;  %s250_s1 = smov [#allocation6]   ;;  %s18_s26 = int_to_ptr.vmem [resolvable:$true] %s17_s26 }
   0x7   :  { %23 = dma.hbm_to_vmem [thread:$0]  %s16_s22, 512, %s18_s26, [#allocation3], %s247_s23, %s247_s23, %s248_s24  }
   0x8   :  { %s43_s30 = sshll.u32 %s250_s1, 4  ;;  %s44_s30 = int_to_ptr.vmem [resolvable:$true] %s43_s30 }
   0x9   :  { %49 = dma.hbm_to_vmem [thread:$0]  %s42_s29, 256, %s44_s30, [#allocation5], %s247_s23, %s247_s23, %s248_s24  }
   0xa   :  { %242 = dma.done.wait [#allocation3], 512  }
   0xb   :  { %243 = vsyncadd [#allocation3], 4294966784 }
   0xc   :  { %244 = dma.done.wait [#allocation5], 1280  }
   0xd   :  { %245 = vsyncadd [#allocation5], 4294966016  ;;  %v118_v0 = vld [vmem:[%s309_s3] sm:$0x1]  ;;  %v75_v1 = vld [vmem:[#allocation4 + $0x38] sm:$0xff]  ;;  %vm76_vm0 = vcmask 523264  }
   0xe   :  { %v74_v2 = vld [vmem:[#allocation4 + $0x30] sm:$0xff]  ;;  %119 = vst [vmem:[%s310_s4] sm:$0x1] %v118_v0  ;;  %142 = vmatpush.msra.mxu2 %v75_v1  ;;  %143 = vmatpush.msra.mxu3 %v75_v1  ;;  %v73_v3 = vld [vmem:[#allocation4 + $0x28] sm:$0xff]  ;;  %v72_v4 = vld [vmem:[#allocation4 + $0x20] sm:$0xff] }
   0xf   :  { %120 = vst [vmem:[%s310_s4 + $0x18] sm:$0x1] %v118_v0  ;;  %97 = vmatpush.msra.mxu0 %v75_v1  ;;  %141 = vmatpush.msra.mxu1 %v75_v1  ;;  %v71_v5 = vld [vmem:[#allocation4 + $0x18] sm:$0xff]  ;;  %v70_v6 = vld [vmem:[#allocation4 + $0x10] sm:$0xff]  ;;  %v69_v7 = vld [vmem:[#allocation4 + $0x8] sm:$0xff] }
  0x10   :  { %145 = vmatpush.msra.mxu2 %v74_v2  ;;  %146 = vmatpush.msra.mxu3 %v74_v2  ;;  %v68_v8 = vld [vmem:[#allocation4] sm:$0xff]  ;;  %v66_v9 = vld [vmem:[#allocation2 + $0x10] sm:$0xff]  ;;  %v67_v10 = vld [vmem:[#allocation2 + $0x18] sm:$0xff] }
  0x11   :  { %98 = vmatpush.msra.mxu0 %v74_v2  ;;  %144 = vmatpush.msra.mxu1 %v74_v2  ;;  %v64_v11 = vld [vmem:[#allocation2] sm:$0xff]  ;;  %v65_v12 = vld [vmem:[#allocation2 + $0x8] sm:$0xff] }
  0x12   :  { %148 = vmatpush.msra.mxu2 %v73_v3  ;;  %149 = vmatpush.msra.mxu3 %v73_v3  ;;  %v121_v13 = vld [vmem:[#allocation6] sm:$0xff]  ;;  %v122_v14 = vld [vmem:[#allocation6 + $0x8] sm:$0xff] }
  0x13   :  { %99 = vmatpush.msra.mxu0 %v73_v3  ;;  %147 = vmatpush.msra.mxu1 %v73_v3 }
  0x14   :  { %151 = vmatpush.msra.mxu2 %v72_v4  ;;  %152 = vmatpush.msra.mxu3 %v72_v4 }
  0x15   :  { %100 = vmatpush.msra.mxu0 %v72_v4  ;;  %150 = vmatpush.msra.mxu1 %v72_v4 }
  0x16   :  { %154 = vmatpush.msra.mxu2 %v71_v5  ;;  %155 = vmatpush.msra.mxu3 %v71_v5 }
  0x17   :  { %101 = vmatpush.msra.mxu0 %v71_v5  ;;  %153 = vmatpush.msra.mxu1 %v71_v5 }
  0x18   :  { %157 = vmatpush.msra.mxu2 %v70_v6  ;;  %158 = vmatpush.msra.mxu3 %v70_v6 }
  0x19   :  { %102 = vmatpush.msra.mxu0 %v70_v6  ;;  %156 = vmatpush.msra.mxu1 %v70_v6 }
  0x1a   :  { %160 = vmatpush.msra.mxu2 %v69_v7  ;;  %161 = vmatpush.msra.mxu3 %v69_v7 }
  0x1b   :  { %103 = vmatpush.msra.mxu0 %v69_v7  ;;  %159 = vmatpush.msra.mxu1 %v69_v7 }
  0x1c   :  { %163 = vmatpush.msra.mxu2 %v68_v8  ;;  %164 = vmatpush.msra.mxu3 %v68_v8 }
  0x1d   :  { %139 = vmatmul.msk.f32.vlgmr.msra.gmra.mxu2 %vm76_vm0, %v66_v9  ;;  %140 = vmatmul.msk.f32.vlgmr.msra.gmra.mxu3 %vm76_vm0, %v67_v10 }
  0x1e   :  { %104 = vmatpush.msra.mxu0 %v68_v8  ;;  %162 = vmatpush.msra.mxu1 %v68_v8 }
  0x1f   :  { %137 = vmatmul.msk.f32.vlgmr.msra.gmra.mxu0 %vm76_vm0, %v64_v11  ;;  %138 = vmatmul.msk.f32.vlgmr.msra.gmra.mxu1 %vm76_vm0, %v65_v12 }
  0x9c   :  { %v106_v15 = vpop.f32.mrf.mxu0  ;;  %v109_v16 = vpop.f32.mrf.mxu1 }
  0x9d   :  { %v123_v17 = vadd.f32 %v121_v13, %v106_v15  ;;  %v124_v18 = vadd.f32 %v122_v14, %v109_v16 }
  0x9f   :  { %127 = vst [vmem:[%s310_s4 + $0x1] sm:$0xff] %v123_v17 }
  0xa0   :  { %128 = vst [vmem:[%s310_s4 + $0x9] sm:$0xff] %v124_v18  ;;  %v112_v19 = vpop.f32.mrf.mxu2  ;;  %v115_v20 = vpop.f32.mrf.mxu3 }
  0xa1   :  { %v125_v21 = vadd.f32 %v121_v13, %v112_v19  ;;  %v126_v22 = vadd.f32 %v122_v14, %v115_v20 }
  0xa3   :  { %129 = vst [vmem:[%s310_s4 + $0x19] sm:$0xff] %v125_v21 }
  0xa4   :  { %130 = vst [vmem:[%s310_s4 + $0x21] sm:$0xff] %v126_v22 }
  0xa5   :  { %135 = vsyncpa [#allocation3], 1 }
  0xa6   :  { %136 = vsyncpa [#allocation5], 1 }

</bundles_post_ra>
